<compile_context>
chip_gen: v7x
topology: tpu7x:2x2x1
jax: 0.10.0
libtpu: 0.0.40
codegen_flags: <defaults>
</compile_context>

<pallas_src>
import functools
import numpy as np
import jax
import jax.numpy as jnp
from jax.experimental import pallas as pl
from jax.experimental.pallas import tpu as pltpu


# ----------------------------------------------------------------------------
# Diffusion schedule (glue, identical to the reference)
# ----------------------------------------------------------------------------
def get_beta_schedule(beta_schedule, *, beta_start, beta_end,
                      num_diffusion_timesteps):
    def sigmoid(x):
        return 1 / (np.exp(-x) + 1)
    if beta_schedule == 'quad':
        betas = np.linspace(beta_start ** 0.5, beta_end ** 0.5,
                            num_diffusion_timesteps, dtype=np.float64) ** 2
    elif beta_schedule == 'linear':
        betas = np.linspace(beta_start, beta_end,
                            num_diffusion_timesteps, dtype=np.float64)
    elif beta_schedule == 'const':
        betas = beta_end * np.ones(num_diffusion_timesteps, dtype=np.float64)
    elif beta_schedule == 'jsd':
        betas = 1.0 / np.linspace(num_diffusion_timesteps, 1,
                                  num_diffusion_timesteps, dtype=np.float64)
    elif beta_schedule == 'sigmoid':
        betas = np.linspace(-6, 6, num_diffusion_timesteps)
        betas = sigmoid(betas) * (beta_end - beta_start) + beta_start
    else:
        raise NotImplementedError(beta_schedule)
    assert betas.shape == (num_diffusion_timesteps,)
    return betas


# ----------------------------------------------------------------------------
# Precomputed operator matrices (tiny; built once per trace)
# ----------------------------------------------------------------------------
_G1D = np.array([1., 4., 6., 4., 1.], dtype=np.float64) / 16.0   # outer(g,g)=K/256


def _gauss_reflect_op(L):
    """(L, L) operator: 1-D Gaussian blur with PyTorch-style reflect pad of 2."""
    M = np.zeros((L, L), np.float64)
    for i in range(L):
        for t in range(-2, 3):
            j = i + t
            if j < 0:
                j = -j
            if j >= L:
                j = 2 * L - 2 - j
            M[i, j] += _G1D[t + 2]
    return M


def _row_shift_ops(H, P):
    """Row-shift operators for the 3x3 conv, block-diag over the P images that
    are stacked along the row axis: (V_up @ X)[h] = X[h-1], (V_dn @ X)[h] = X[h+1]
    (zero at each image's boundary).  kh = 1 is the identity and needs no op."""
    v_up = np.zeros((H, H), np.float32)
    v_dn = np.zeros((H, H), np.float32)
    for h in range(H):
        if h - 1 >= 0:
            v_up[h, h - 1] = 1.0       # kh = 0
        if h + 1 < H:
            v_dn[h, h + 1] = 1.0       # kh = 2
    eye_p = np.eye(P, dtype=np.float32)
    return np.kron(eye_p, v_up), np.kron(eye_p, v_dn)


def _conv_lane_op(w, W):
    """conv_x lane operator for the (rows, W*Ci) layout with the three kh taps
    folded along K: Mcat[(kh,wi,ci),(wo,co)] = sum_kw [wi==wo+kw-1]*w[co,ci,kh,kw].
    # TODO(synk): O(W^2*Ci*Co) dense build; factor in-kernel at large W."""
    Co, Ci = w.shape[0], w.shape[1]
    blocks = []
    for kh in range(3):
        M = jnp.zeros((W * Ci, W * Co), jnp.float32)
        for kw in range(3):
            S = np.zeros((W, W), np.float32)
            for wo in range(W):
                wi = wo + kw - 1
                if 0 <= wi < W:
                    S[wi, wo] = 1.0                      # zero pad at the edges
            M = M + jnp.kron(jnp.asarray(S), w[:, :, kh, kw].T)
        blocks.append(M)
    return jnp.concatenate(blocks, axis=0)               # (3*W*Ci, W*Co)


def _pyramid_operators(H, W, C, P, num_high):
    """Per level l (input Hl, Wl): (A_blk, R_dn) so that
         down = A_blk @ cur @ R_dn   (gauss5x5 + reflect + ::2 decimation),
       A_blk block-diag over the P row-stacked images.  Last level also gets
       (B_blk, R_up) so that  up = B_blk @ down @ R_up  (zero-inject + 4*gauss)."""
    eye_p, eye_c = np.eye(P), np.eye(C)
    level_ops, last_ops = [], None
    Hl, Wl = H, W
    for l in range(num_high):
        Gh, Gw = _gauss_reflect_op(Hl), _gauss_reflect_op(Wl)
        a_blk = np.kron(eye_p, Gh[0::2, :])               # (P*Hl/2, P*Hl)
        r_dn = np.kron(Gw[0::2, :].T, eye_c)              # (Wl*C, Wl*C/2)
        level_ops.append((a_blk.astype(np.float32), r_dn.astype(np.float32)))
        if l == num_high - 1:
            b_blk = np.kron(eye_p, 2.0 * Gh[:, 0::2])     # (P*Hl, P*Hl/2)
            r_up = np.kron((2.0 * Gw[:, 0::2]).T, eye_c)  # (Wl*C/2, Wl*C)
            last_ops = (b_blk.astype(np.float32), r_up.astype(np.float32))
        Hl //= 2
        Wl //= 2
    return level_ops, last_ops


# ----------------------------------------------------------------------------
# Fused kernel: conv_x -> pyramid levels -> high-freq diff -> diffusion mix
# ----------------------------------------------------------------------------
def _ddm_forward_kernel(*refs, num_high, nb, hh):
    (x_ref, gt_ref, e_ref, sa_ref, s1_ref,
     vup_ref, vdn_ref, mcat_ref, bias_ref) = refs[:9]
    lvl_refs = refs[9:9 + 2 * num_high]
    bup_ref, rup_ref = refs[9 + 2 * num_high:11 + 2 * num_high]
    out_ref = refs[11 + 2 * num_high]

    f32, bf16 = jnp.float32, jnp.bfloat16

    # Nb x-images then Nb gt-images, stacked along the row (sublane) axis.
    xg = jnp.concatenate([x_ref[...], gt_ref[...]], axis=0)      # (P*H, W*Ci) bf16

    # conv_x: 2 row-shift matmuls (kh=0,2; kh=1 is identity) + 1 wide-K lane
    # matmul (K = 3*W*Ci) + f32 bias row.
    rows_m1 = jnp.dot(vup_ref[...], xg, preferred_element_type=f32).astype(bf16)
    rows_p1 = jnp.dot(vdn_ref[...], xg, preferred_element_type=f32).astype(bf16)
    rows_cat = jnp.concatenate([rows_m1, xg, rows_p1], axis=1)   # (P*H, 3*W*Ci)
    cur = jnp.dot(rows_cat, mcat_ref[...],
                  preferred_element_type=f32) + bias_ref[...]    # (P*H, W*Co) f32

    # Laplacian pyramid: only pyr[-2] (last level's high-freq diff) is needed.
    high = None
    for l in range(num_high):
        a_blk = lvl_refs[2 * l][...]
        r_dn = lvl_refs[2 * l + 1][...]
        t = jnp.dot(a_blk, cur.astype(bf16), preferred_element_type=f32)
        down = jnp.dot(t.astype(bf16), r_dn, preferred_element_type=f32)
        if l == num_high - 1:
            t = jnp.dot(bup_ref[...], down.astype(bf16), preferred_element_type=f32)
            up = jnp.dot(t.astype(bf16), rup_ref[...], preferred_element_type=f32)
            high = cur - up                       # f32, (P*Hh, Wh*Co)
        cur = down

    rows_x = nb * hh
    input_high = high[:rows_x, :]                 # sublane slice at multiple of 8
    gt_high = high[rows_x:, :]
    # fused diffusion forward-noising mix (per-image scalars as per-row columns)
    xet = gt_high * sa_ref[...] + e_ref[...] * s1_ref[...]
    # single lane-dense (>=128-lane) packed store
    out_ref[...] = jnp.concatenate([input_high, gt_high, xet], axis=1)


# ----------------------------------------------------------------------------
# Net.forward (training branch), restricted to the defined parts
# ----------------------------------------------------------------------------
def net_forward(x_nchw, gt_nchw, conv_x_w, conv_x_b, *, num_high, betas,
                t_key, e_key):
    N, Ci, H, W = x_nchw.shape
    Co = conv_x_w.shape[0]
    # reference's F.interpolate fallback is never hit for even sizes
    assert H % (1 << num_high) == 0 and W % (1 << num_high) == 0
    Hh, Wh = H >> (num_high - 1), W >> (num_high - 1)

    # batch block: largest divisor of N keeping the stacked-row M dim <= 256
    # (MXU tile on v6e/v7x); leaves >=2 "parallel" grid steps for v7x's 2 TCs
    # once the batch is large enough.
    Nb = 1
    for d in range(1, N + 1):
        if N % d == 0 and 2 * d * H <= 256:
            Nb = d
    num_blocks = N // Nb
    P = 2 * Nb                                      # images stacked per step

    # layout: NCHW -> lane-dense rows (N*H, W*C); bf16 for the MXU inputs
    def nchw_to_rows(z):
        n_, c_, h_, w_ = z.shape
        return jnp.transpose(z, (0, 2, 3, 1)).reshape(n_ * h_, w_ * c_)

    x_rows = nchw_to_rows(x_nchw).astype(jnp.bfloat16)
    gt_rows = nchw_to_rows(gt_nchw).astype(jnp.bfloat16)

    # diffusion schedule glue (matches the PyTorch forward)
    num_timesteps = betas.shape[0]
    t = jax.random.randint(t_key, (N // 2 + 1,), 0, num_timesteps)
    t = jnp.concatenate([t, num_timesteps - t - 1], axis=0)[:N]
    a = jnp.cumprod(1.0 - betas)[t].astype(jnp.float32)           # (N,)
    sqrt_a = jnp.sqrt(a)
    sqrt_1ma = jnp.sqrt(1.0 - a)
    sa_rows = jnp.repeat(sqrt_a, Hh)[:, None]                     # (N*Hh, 1) f32
    s1_rows = jnp.repeat(sqrt_1ma, Hh)[:, None]
    e_nhwc = jax.random.normal(e_key, (N, Hh, Wh, Co), jnp.float32)
    e_rows = e_nhwc.reshape(N * Hh, Wh * Co)

    # precomputed operators (Gaussian ops exact in bf16; conv weights ~bf16 eps)
    bf = jnp.bfloat16
    level_ops, (b_blk, r_up_op) = _pyramid_operators(H, W, Co, P, num_high)
    v_up, v_dn = _row_shift_ops(H, P)
    mcat = _conv_lane_op(conv_x_w, W).astype(bf)
    bias_row = jnp.tile(conv_x_b.astype(jnp.float32), W)[None, :]  # (1, W*Co) f32

    def shared(arr):        # whole-array block, identical every grid step
        zeros = (0,) * arr.ndim
        return pl.BlockSpec(arr.shape, lambda g, zeros=zeros: zeros)

    def rowblock(rows, lanes):   # block of `rows` rows per grid step
        return pl.BlockSpec((rows, lanes), lambda g: (g, 0))

    inputs = [x_rows, gt_rows, e_rows, sa_rows, s1_rows,
              jnp.asarray(v_up, bf), jnp.asarray(v_dn, bf), mcat, bias_row]
    in_specs = [rowblock(Nb * H, W * Ci), rowblock(Nb * H, W * Ci),
                rowblock(Nb * Hh, Wh * Co),
                rowblock(Nb * Hh, 1), rowblock(Nb * Hh, 1),
                shared(v_up), shared(v_dn), shared(mcat), shared(bias_row)]
    for a_blk, r_dn in level_ops:
        inputs += [jnp.asarray(a_blk, bf), jnp.asarray(r_dn, bf)]
        in_specs += [shared(a_blk), shared(r_dn)]
    inputs += [jnp.asarray(b_blk, bf), jnp.asarray(r_up_op, bf)]
    in_specs += [shared(b_blk), shared(r_up_op)]

    out_packed = pl.pallas_call(
        functools.partial(_ddm_forward_kernel, num_high=num_high, nb=Nb, hh=Hh),
        out_shape=jax.ShapeDtypeStruct((N * Hh, 3 * Wh * Co), jnp.float32),
        grid=(num_blocks,),
        in_specs=in_specs,
        out_specs=rowblock(Nb * Hh, 3 * Wh * Co),
        compiler_params=pltpu.CompilerParams(
            dimension_semantics=("parallel",),
            vmem_limit_bytes=32 * 1024 * 1024),   # safe on v5e/v6e/v7x
    )(*inputs)

    whc = Wh * Co
    ih_rows = out_packed[:, :whc]
    gh_rows = out_packed[:, whc:2 * whc]
    xet_rows = out_packed[:, 2 * whc:]

    # NCHW transposes kept only to preserve the original module's layout; a
    # row/NHWC consumer could take `out_packed` / `e_nhwc` directly.
    def rows_to_nchw(z):
        return jnp.transpose(z.reshape(N, Hh, Wh, Co), (0, 3, 1, 2))

    return {
        'e': jnp.transpose(e_nhwc, (0, 3, 1, 2)),          # NCHW, same noise as xet
        'gt': rows_to_nchw(gh_rows),
        'xet': rows_to_nchw(xet_rows),                     # would feed the DiT Unet
        'input_high': rows_to_nchw(ih_rows),               # conditioning for DiT
        't': t,
    }


# ----------------------------------------------------------------------------
# Pure-JAX/XLA reference of the same math (for a correctness self-check)
# ----------------------------------------------------------------------------
def _reference_forward(x, gt, w, b, num_high, sqrt_a, sqrt_1ma, e_nchw):
    C = w.shape[0]
    g2d = np.outer(_G1D, _G1D).astype(np.float32)
    kdw = jnp.asarray(np.tile(g2d[None, None], (C, 1, 1, 1)))   # (C,1,5,5)
    hi = jax.lax.Precision.HIGHEST

    def conv_x(z):
        y = jax.lax.conv_general_dilated(
            z, w, (1, 1), ((1, 1), (1, 1)),
            dimension_numbers=('NCHW', 'OIHW', 'NCHW'), precision=hi)
        return y + b[None, :, None, None]

    def conv_gauss(z, k):
        zp = jnp.pad(z, ((0, 0), (0, 0), (2, 2), (2, 2)), mode='reflect')
        return jax.lax.conv_general_dilated(
            zp, k, (1, 1), 'VALID',
            dimension_numbers=('NCHW', 'OIHW', 'NCHW'),
            feature_group_count=C, precision=hi)

    def upsample(z):
        n_, c_, h_, w_ = z.shape
        u = jnp.zeros((n_, c_, 2 * h_, 2 * w_), z.dtype).at[:, :, ::2, ::2].set(z)
        return conv_gauss(u, 4.0 * kdw)

    def high_of(img):
        cur = conv_x(img)
        for l in range(num_high):
            down = conv_gauss(cur, kdw)[:, :, ::2, ::2]
            if l == num_high - 1:
                return cur - upsample(down)
            cur = down

    ih = high_of(x)
    gh = high_of(gt)
    xet = gh * sqrt_a[:, None, None, None] + e_nchw * sqrt_1ma[:, None, None, None]
    return ih, gh, xet


# ----------------------------------------------------------------------------
if __name__ == "__main__":
    key = jax.random.PRNGKey(0)
    N, Ci, H, W = 2, 3, 16, 16       # small NCHW input, like the PyTorch module
    embed_dim = 8                    # LP_config.embed_dim
    num_high = 2                     # LP_config.num_high
    T = 20                           # num_diffusion_timesteps (small)

    k0, k1, k2, k3, k4, k5 = jax.random.split(key, 6)
    x = jax.random.normal(k0, (N, Ci, H, W), jnp.float32)
    gt = jax.random.normal(k1, (N, Ci, H, W), jnp.float32)

    # conv_x params, deterministic init matching _init_weights: normal(0, 0.02)
    conv_x_w = 0.02 * jax.random.normal(k2, (embed_dim, Ci, 3, 3), jnp.float32)
    conv_x_b = 0.02 * jax.random.normal(k3, (embed_dim,), jnp.float32)

    betas = jnp.asarray(get_beta_schedule('linear', beta_start=1e-4,
                                          beta_end=0.02,
                                          num_diffusion_timesteps=T),
                        dtype=jnp.float32)

    out = net_forward(x, gt, conv_x_w, conv_x_b, num_high=num_high,
                      betas=betas, t_key=k4, e_key=k5)
    out = jax.block_until_ready(out)

    # shapes implied by the module
    assert out['gt'].shape == (N, embed_dim, H // 2, W // 2)
    assert out['xet'].shape == (N, embed_dim, H // 2, W // 2)
    assert out['input_high'].shape == (N, embed_dim, H // 2, W // 2)

    # numerical self-check against a pure-JAX f32 reference of the same math
    # (kernel feeds the MXU in bf16 with f32 accumulation -> slightly wider atol)
    a = jnp.cumprod(1.0 - betas)[out['t']].astype(jnp.float32)
    ih_r, gh_r, xet_r = _reference_forward(x, gt, conv_x_w, conv_x_b, num_high,
                                           jnp.sqrt(a), jnp.sqrt(1.0 - a),
                                           out['e'])
    np.testing.assert_allclose(np.asarray(out['input_high']), np.asarray(ih_r),
                               rtol=2e-2, atol=6e-3)
    np.testing.assert_allclose(np.asarray(out['gt']), np.asarray(gh_r),
                               rtol=2e-2, atol=6e-3)
    np.testing.assert_allclose(np.asarray(out['xet']), np.asarray(xet_r),
                               rtol=2e-2, atol=6e-3)

    print("KERNEL_OK")
</pallas_src>

<mosaic_0001>
module attributes {stable_mosaic.version = 11 : i64} {
  func.func @_ddm_forward_kernel(%arg0: i32, %arg1: memref<32x48xbf16, #tpu.memory_space<vmem>>, %arg2: memref<32x48xbf16, #tpu.memory_space<vmem>>, %arg3: memref<16x64xf32, #tpu.memory_space<vmem>>, %arg4: memref<16x1xf32, #tpu.memory_space<vmem>>, %arg5: memref<16x1xf32, #tpu.memory_space<vmem>>, %arg6: memref<64x64xbf16, #tpu.memory_space<vmem>>, %arg7: memref<64x64xbf16, #tpu.memory_space<vmem>>, %arg8: memref<144x128xbf16, #tpu.memory_space<vmem>>, %arg9: memref<1x128xf32, #tpu.memory_space<vmem>>, %arg10: memref<32x64xbf16, #tpu.memory_space<vmem>>, %arg11: memref<128x64xbf16, #tpu.memory_space<vmem>>, %arg12: memref<16x32xbf16, #tpu.memory_space<vmem>>, %arg13: memref<64x32xbf16, #tpu.memory_space<vmem>>, %arg14: memref<32x16xbf16, #tpu.memory_space<vmem>>, %arg15: memref<32x64xbf16, #tpu.memory_space<vmem>>, %arg16: memref<16x192xf32, #tpu.memory_space<vmem>>) attributes {dimension_semantics = [#tpu.dimension_semantics<parallel>], iteration_bounds = array<i64: 1>, scalar_prefetch = 0 : i64, scratch_operands = 0 : i64, tpu.core_type = #tpu.core_type<tc>, window_params = [{transform_indices = @transform_0, window_bounds = array<i64: 32, 48>}, {transform_indices = @transform_1, window_bounds = array<i64: 32, 48>}, {transform_indices = @transform_2, window_bounds = array<i64: 16, 64>}, {transform_indices = @transform_3, window_bounds = array<i64: 16, 1>}, {transform_indices = @transform_4, window_bounds = array<i64: 16, 1>}, {pipeline_mode = #tpu.pipeline_mode<synchronous>, transform_indices = @transform_5, window_bounds = array<i64: 64, 64>}, {pipeline_mode = #tpu.pipeline_mode<synchronous>, transform_indices = @transform_6, window_bounds = array<i64: 64, 64>}, {pipeline_mode = #tpu.pipeline_mode<synchronous>, transform_indices = @transform_7, window_bounds = array<i64: 144, 128>}, {pipeline_mode = #tpu.pipeline_mode<synchronous>, transform_indices = @transform_8, window_bounds = array<i64: 1, 128>}, {pipeline_mode = #tpu.pipeline_mode<synchronous>, transform_indices = @transform_9, window_bounds = array<i64: 32, 64>}, {pipeline_mode = #tpu.pipeline_mode<synchronous>, transform_indices = @transform_10, window_bounds = array<i64: 128, 64>}, {pipeline_mode = #tpu.pipeline_mode<synchronous>, transform_indices = @transform_11, window_bounds = array<i64: 16, 32>}, {pipeline_mode = #tpu.pipeline_mode<synchronous>, transform_indices = @transform_12, window_bounds = array<i64: 64, 32>}, {pipeline_mode = #tpu.pipeline_mode<synchronous>, transform_indices = @transform_13, window_bounds = array<i64: 32, 16>}, {pipeline_mode = #tpu.pipeline_mode<synchronous>, transform_indices = @transform_14, window_bounds = array<i64: 32, 64>}, {transform_indices = @transform_15, window_bounds = array<i64: 16, 192>}]} {
    %c0 = arith.constant 0 : index
    %c0_0 = arith.constant 0 : index
    %0 = vector.load %arg1[%c0, %c0_0] : memref<32x48xbf16, #tpu.memory_space<vmem>>, vector<32x48xbf16>
    %c0_1 = arith.constant 0 : index
    %c0_2 = arith.constant 0 : index
    %1 = vector.load %arg2[%c0_1, %c0_2] : memref<32x48xbf16, #tpu.memory_space<vmem>>, vector<32x48xbf16>
    %2 = tpu.concatenate %0, %1 in 0 : vector<32x48xbf16>, vector<32x48xbf16> -> vector<64x48xbf16>
    %c0_3 = arith.constant 0 : index
    %c0_4 = arith.constant 0 : index
    %3 = vector.load %arg6[%c0_3, %c0_4] : memref<64x64xbf16, #tpu.memory_space<vmem>>, vector<64x64xbf16>
    %cst = arith.constant dense<0.000000e+00> : vector<64x48xf32>
    %4 = tpu.matmul %3, %2, %cst {dimension_numbers = #tpu.dot_dimension_numbers<[1], [0], [0], [1], [0, 0, 1, 1], [], []>} : vector<64x64xbf16>, vector<64x48xbf16>, vector<64x48xf32> -> vector<64x48xf32>
    %5 = arith.truncf %4 : vector<64x48xf32> to vector<64x48xbf16>
    %c0_5 = arith.constant 0 : index
    %c0_6 = arith.constant 0 : index
    %6 = vector.load %arg7[%c0_5, %c0_6] : memref<64x64xbf16, #tpu.memory_space<vmem>>, vector<64x64xbf16>
    %cst_7 = arith.constant dense<0.000000e+00> : vector<64x48xf32>
    %7 = tpu.matmul %6, %2, %cst_7 {dimension_numbers = #tpu.dot_dimension_numbers<[1], [0], [0], [1], [0, 0, 1, 1], [], []>} : vector<64x64xbf16>, vector<64x48xbf16>, vector<64x48xf32> -> vector<64x48xf32>
    %8 = arith.truncf %7 : vector<64x48xf32> to vector<64x48xbf16>
    %9 = tpu.concatenate %5, %2, %8 in 1 : vector<64x48xbf16>, vector<64x48xbf16>, vector<64x48xbf16> -> vector<64x144xbf16>
    %c0_8 = arith.constant 0 : index
    %c0_9 = arith.constant 0 : index
    %10 = vector.load %arg8[%c0_8, %c0_9] : memref<144x128xbf16, #tpu.memory_space<vmem>>, vector<144x128xbf16>
    %cst_10 = arith.constant dense<0.000000e+00> : vector<64x128xf32>
    %11 = tpu.matmul %9, %10, %cst_10 {dimension_numbers = #tpu.dot_dimension_numbers<[1], [0], [0], [1], [0, 0, 1, 1], [], []>} : vector<64x144xbf16>, vector<144x128xbf16>, vector<64x128xf32> -> vector<64x128xf32>
    %c0_11 = arith.constant 0 : index
    %c0_12 = arith.constant 0 : index
    %12 = vector.load %arg9[%c0_11, %c0_12] : memref<1x128xf32, #tpu.memory_space<vmem>>, vector<1x128xf32>
    %13 = vector.broadcast %12 : vector<1x128xf32> to vector<64x128xf32>
    %14 = arith.addf %11, %13 : vector<64x128xf32>
    %c0_13 = arith.constant 0 : index
    %c0_14 = arith.constant 0 : index
    %15 = vector.load %arg10[%c0_13, %c0_14] : memref<32x64xbf16, #tpu.memory_space<vmem>>, vector<32x64xbf16>
    %c0_15 = arith.constant 0 : index
    %c0_16 = arith.constant 0 : index
    %16 = vector.load %arg11[%c0_15, %c0_16] : memref<128x64xbf16, #tpu.memory_space<vmem>>, vector<128x64xbf16>
    %17 = arith.truncf %14 : vector<64x128xf32> to vector<64x128xbf16>
    %cst_17 = arith.constant dense<0.000000e+00> : vector<32x128xf32>
    %18 = tpu.matmul %15, %17, %cst_17 {dimension_numbers = #tpu.dot_dimension_numbers<[1], [0], [0], [1], [0, 0, 1, 1], [], []>} : vector<32x64xbf16>, vector<64x128xbf16>, vector<32x128xf32> -> vector<32x128xf32>
    %19 = arith.truncf %18 : vector<32x128xf32> to vector<32x128xbf16>
    %cst_18 = arith.constant dense<0.000000e+00> : vector<32x64xf32>
    %20 = tpu.matmul %19, %16, %cst_18 {dimension_numbers = #tpu.dot_dimension_numbers<[1], [0], [0], [1], [0, 0, 1, 1], [], []>} : vector<32x128xbf16>, vector<128x64xbf16>, vector<32x64xf32> -> vector<32x64xf32>
    %c0_19 = arith.constant 0 : index
    %c0_20 = arith.constant 0 : index
    %21 = vector.load %arg12[%c0_19, %c0_20] : memref<16x32xbf16, #tpu.memory_space<vmem>>, vector<16x32xbf16>
    %c0_21 = arith.constant 0 : index
    %c0_22 = arith.constant 0 : index
    %22 = vector.load %arg13[%c0_21, %c0_22] : memref<64x32xbf16, #tpu.memory_space<vmem>>, vector<64x32xbf16>
    %23 = arith.truncf %20 : vector<32x64xf32> to vector<32x64xbf16>
    %cst_23 = arith.constant dense<0.000000e+00> : vector<16x64xf32>
    %24 = tpu.matmul %21, %23, %cst_23 {dimension_numbers = #tpu.dot_dimension_numbers<[1], [0], [0], [1], [0, 0, 1, 1], [], []>} : vector<16x32xbf16>, vector<32x64xbf16>, vector<16x64xf32> -> vector<16x64xf32>
    %25 = arith.truncf %24 : vector<16x64xf32> to vector<16x64xbf16>
    %cst_24 = arith.constant dense<0.000000e+00> : vector<16x32xf32>
    %26 = tpu.matmul %25, %22, %cst_24 {dimension_numbers = #tpu.dot_dimension_numbers<[1], [0], [0], [1], [0, 0, 1, 1], [], []>} : vector<16x64xbf16>, vector<64x32xbf16>, vector<16x32xf32> -> vector<16x32xf32>
    %c0_25 = arith.constant 0 : index
    %c0_26 = arith.constant 0 : index
    %27 = vector.load %arg14[%c0_25, %c0_26] : memref<32x16xbf16, #tpu.memory_space<vmem>>, vector<32x16xbf16>
    %28 = arith.truncf %26 : vector<16x32xf32> to vector<16x32xbf16>
    %cst_27 = arith.constant dense<0.000000e+00> : vector<32x32xf32>
    %29 = tpu.matmul %27, %28, %cst_27 {dimension_numbers = #tpu.dot_dimension_numbers<[1], [0], [0], [1], [0, 0, 1, 1], [], []>} : vector<32x16xbf16>, vector<16x32xbf16>, vector<32x32xf32> -> vector<32x32xf32>
    %30 = arith.truncf %29 : vector<32x32xf32> to vector<32x32xbf16>
    %c0_28 = arith.constant 0 : index
    %c0_29 = arith.constant 0 : index
    %31 = vector.load %arg15[%c0_28, %c0_29] : memref<32x64xbf16, #tpu.memory_space<vmem>>, vector<32x64xbf16>
    %cst_30 = arith.constant dense<0.000000e+00> : vector<32x64xf32>
    %32 = tpu.matmul %30, %31, %cst_30 {dimension_numbers = #tpu.dot_dimension_numbers<[1], [0], [0], [1], [0, 0, 1, 1], [], []>} : vector<32x32xbf16>, vector<32x64xbf16>, vector<32x64xf32> -> vector<32x64xf32>
    %33 = arith.subf %20, %32 : vector<32x64xf32>
    %34 = vector.extract_strided_slice %33 {offsets = [0, 0], sizes = [16, 64], strides = [1, 1]} : vector<32x64xf32> to vector<16x64xf32>
    %35 = vector.extract_strided_slice %33 {offsets = [16, 0], sizes = [16, 64], strides = [1, 1]} : vector<32x64xf32> to vector<16x64xf32>
    %c0_31 = arith.constant 0 : index
    %c0_32 = arith.constant 0 : index
    %36 = vector.load %arg4[%c0_31, %c0_32] : memref<16x1xf32, #tpu.memory_space<vmem>>, vector<16x1xf32>
    %37 = vector.broadcast %36 : vector<16x1xf32> to vector<16x64xf32>
    %38 = arith.mulf %35, %37 : vector<16x64xf32>
    %c0_33 = arith.constant 0 : index
    %c0_34 = arith.constant 0 : index
    %39 = vector.load %arg3[%c0_33, %c0_34] : memref<16x64xf32, #tpu.memory_space<vmem>>, vector<16x64xf32>
    %c0_35 = arith.constant 0 : index
    %c0_36 = arith.constant 0 : index
    %40 = vector.load %arg5[%c0_35, %c0_36] : memref<16x1xf32, #tpu.memory_space<vmem>>, vector<16x1xf32>
    %41 = vector.broadcast %40 : vector<16x1xf32> to vector<16x64xf32>
    %42 = arith.mulf %39, %41 : vector<16x64xf32>
    %43 = arith.addf %38, %42 : vector<16x64xf32>
    %44 = tpu.concatenate %34, %35, %43 in 1 : vector<16x64xf32>, vector<16x64xf32>, vector<16x64xf32> -> vector<16x192xf32>
    %c0_37 = arith.constant 0 : index
    %c0_38 = arith.constant 0 : index
    %45 = vector.load %arg16[%c0_37, %c0_38] : memref<16x192xf32, #tpu.memory_space<vmem>>, vector<16x192xf32>
    tpu.vector_store %arg16[%c0_37, %c0_38], %44 {strides = array<i32>} : memref<16x192xf32, #tpu.memory_space<vmem>>, vector<16x192xf32>,
    return
  }
  func.func @transform_0(%arg0: i32) -> (i32, i32) {
    %c0_i32 = arith.constant 0 : i32
    %c0_i32_0 = arith.constant 0 : i32
    return %arg0, %c0_i32 : i32, i32
  }
  func.func @transform_1(%arg0: i32) -> (i32, i32) {
    %c0_i32 = arith.constant 0 : i32
    %c0_i32_0 = arith.constant 0 : i32
    return %arg0, %c0_i32 : i32, i32
  }
  func.func @transform_2(%arg0: i32) -> (i32, i32) {
    %c0_i32 = arith.constant 0 : i32
    %c0_i32_0 = arith.constant 0 : i32
    return %arg0, %c0_i32 : i32, i32
  }
  func.func @transform_3(%arg0: i32) -> (i32, i32) {
    %c0_i32 = arith.constant 0 : i32
    %c0_i32_0 = arith.constant 0 : i32
    return %arg0, %c0_i32 : i32, i32
  }
  func.func @transform_4(%arg0: i32) -> (i32, i32) {
    %c0_i32 = arith.constant 0 : i32
    %c0_i32_0 = arith.constant 0 : i32
    return %arg0, %c0_i32 : i32, i32
  }
  func.func @transform_5(%arg0: i32) -> (i32, i32) {
    %c0_i32 = arith.constant 0 : i32
    %c0_i32_0 = arith.constant 0 : i32
    %c0_i32_1 = arith.constant 0 : i32
    return %c0_i32, %c0_i32_0 : i32, i32
  }
  func.func @transform_6(%arg0: i32) -> (i32, i32) {
    %c0_i32 = arith.constant 0 : i32
    %c0_i32_0 = arith.constant 0 : i32
    %c0_i32_1 = arith.constant 0 : i32
    return %c0_i32, %c0_i32_0 : i32, i32
  }
  func.func @transform_7(%arg0: i32) -> (i32, i32) {
    %c0_i32 = arith.constant 0 : i32
    %c0_i32_0 = arith.constant 0 : i32
    %c0_i32_1 = arith.constant 0 : i32
    return %c0_i32, %c0_i32_0 : i32, i32
  }
  func.func @transform_8(%arg0: i32) -> (i32, i32) {
    %c0_i32 = arith.constant 0 : i32
    %c0_i32_0 = arith.constant 0 : i32
    %c0_i32_1 = arith.constant 0 : i32
    return %c0_i32, %c0_i32_0 : i32, i32
  }
  func.func @transform_9(%arg0: i32) -> (i32, i32) {
    %c0_i32 = arith.constant 0 : i32
    %c0_i32_0 = arith.constant 0 : i32
    %c0_i32_1 = arith.constant 0 : i32
    return %c0_i32, %c0_i32_0 : i32, i32
  }
  func.func @transform_10(%arg0: i32) -> (i32, i32) {
    %c0_i32 = arith.constant 0 : i32
    %c0_i32_0 = arith.constant 0 : i32
    %c0_i32_1 = arith.constant 0 : i32
    return %c0_i32, %c0_i32_0 : i32, i32
  }
  func.func @transform_11(%arg0: i32) -> (i32, i32) {
    %c0_i32 = arith.constant 0 : i32
    %c0_i32_0 = arith.constant 0 : i32
    %c0_i32_1 = arith.constant 0 : i32
    return %c0_i32, %c0_i32_0 : i32, i32
  }
  func.func @transform_12(%arg0: i32) -> (i32, i32) {
    %c0_i32 = arith.constant 0 : i32
    %c0_i32_0 = arith.constant 0 : i32
    %c0_i32_1 = arith.constant 0 : i32
    return %c0_i32, %c0_i32_0 : i32, i32
  }
  func.func @transform_13(%arg0: i32) -> (i32, i32) {
    %c0_i32 = arith.constant 0 : i32
    %c0_i32_0 = arith.constant 0 : i32
    %c0_i32_1 = arith.constant 0 : i32
    return %c0_i32, %c0_i32_0 : i32, i32
  }
  func.func @transform_14(%arg0: i32) -> (i32, i32) {
    %c0_i32 = arith.constant 0 : i32
    %c0_i32_0 = arith.constant 0 : i32
    %c0_i32_1 = arith.constant 0 : i32
    return %c0_i32, %c0_i32_0 : i32, i32
  }
  func.func @transform_15(%arg0: i32) -> (i32, i32) {
    %c0_i32 = arith.constant 0 : i32
    %c0_i32_0 = arith.constant 0 : i32
    return %arg0, %c0_i32 : i32, i32
  }
}

</mosaic_0001>

<bundles_post_ra>
// kernel: tpu_custom_call.1
= control target key start
LH: loop header
LB: loop body
LE: loop exit
PB: predicated region body
PF: predicated region fallthrough
CT: control target
= control target key end

     0   :  { %20 = vsyncpa [#allocation3], 0  ;;  %s1824_s0 = inlined_call_operand.vmem [shape: bf16[32,48], index: 0, kind: input, shape index: {}]   ;;  %s1825_s1 = inlined_call_operand.hbm [shape: bf16[32,48], index: 1, kind: input, shape index: {}]   ;;  %s1826_s2 = inlined_call_operand.hbm [shape: f32[16,64], index: 2, kind: input, shape index: {}]   ;;  %s1827_s3 = inlined_call_operand.vmem [shape: f32[16,1], index: 3, kind: input, shape index: {}]   ;;  %s1828_s4 = inlined_call_operand.vmem [shape: f32[16,1], index: 4, kind: input, shape index: {}]   ;;  %s1829_s5 = inlined_call_operand.vmem [shape: bf16[64,64], index: 5, kind: input, shape index: {}]   ;;  %s1830_s6 = inlined_call_operand.vmem [shape: bf16[64,64], index: 6, kind: input, shape index: {}]   ;;  %s1831_s7 = inlined_call_operand.vmem [shape: bf16[144,128], index: 7, kind: input, shape index: {}]   ;;  %s1832_s8 = inlined_call_operand.hbm [shape: f32[1,128], index: 8, kind: input, shape index: {}]   ;;  %s1833_s9 = inlined_call_operand.vmem [shape: bf16[32,64], index: 9, kind: input, shape index: {}]   ;;  %s1834_s10 = inlined_call_operand.vmem [shape: bf16[128,64], index: 10, kind: input, shape index: {}]   ;;  %s1835_s11 = inlined_call_operand.hbm [shape: bf16[16,32], index: 11, kind: input, shape index: {}]   ;;  %s1836_s12 = inlined_call_operand.vmem [shape: bf16[64,32], index: 12, kind: input, shape index: {}]   ;;  %s1837_s13 = inlined_call_operand.vmem [shape: bf16[32,16], index: 13, kind: input, shape index: {}]   ;;  %s1838_s14 = inlined_call_operand.vmem [shape: bf16[32,64], index: 14, kind: input, shape index: {}]   ;;  %s1839_s15 = inlined_call_operand.hbm [shape: f32[16,192], index: 15, kind: output, shape index: {}]  }
   0x1   :  { %21 = vsyncpa [#allocation6], 0 }
   0x2   :  { %22 = vsyncpa [#allocation9], 0 }
   0x3   :  { %23 = vsyncpa [#allocation4], 0  ;;  %s1468_s18 = smov [#allocation5]   ;;  %s1350_s22 = scalar_lea.hbm %s1826_s2, 256 }
   0x4   :  { %s43_s19 = sshll.u32 %s1468_s18, 4  ;;  %p1351_p0 = scmp.ne.s32.totalorder %s1826_s2, %s1350_s22  ;;  %s44_s19 = int_to_ptr.vmem [resolvable:$true] %s43_s19 }
   0x5   :  { %p1354_p1 = scmp.lt.u32.totalorder %s1350_s22, %s1826_s2 }
   0x7   :  { %p1356_p2 = pnand %p1354_p1, %p1351_p0 }
   0x9   :  { %1359 = shalt.err (!%p1356_p2)
}
   0xa   :  { %s1360_s27 = scalar_lea.vmem %s44_s19, 256  ;;  %p1365_p4 = scmp.lt.s32.totalorder %s44_s19, %s44_s19 }
   0xb   :  { %p1361_p3 = scmp.ne.s32.totalorder %s44_s19, %s1360_s27  ;;  %p1366_p5 = scmp.lt.s32.totalorder %s1360_s27, %s1360_s27 }
   0xd   :  { %p1367_p6 = por %p1366_p5, %p1365_p4 }
   0xf   :  { %p1368_p7 = pnand %p1367_p6, %p1361_p3 }
  0x11   :  { %1371 = shalt.err (!%p1368_p7)
}
  0x12   :  { %s1469_s28 = smov 128   ;;  %s1470_s29 = smov 8  }
  0x13   :  { %49 = dma.hbm_to_vmem [thread:$0]  %s1826_s2, 256, %s44_s19, [#allocation6], %s1469_s28, %s1469_s28, %s1470_s29  }
  0x14   :  { %s1471_s17 = smov [#allocation2]   ;;  %s1372_s22 = scalar_lea.hbm %s1825_s1, 256 }
  0x15   :  { %s31_s18 = sshll.u32 %s1471_s17, 4  ;;  %p1373_p8 = scmp.ne.s32.totalorder %s1825_s1, %s1372_s22  ;;  %s32_s18 = int_to_ptr.vmem [resolvable:$true] %s31_s18 }
  0x16   :  { %p1376_p9 = scmp.lt.u32.totalorder %s1372_s22, %s1825_s1 }
  0x18   :  { %p1378_p10 = pnand %p1376_p9, %p1373_p8 }
  0x1a   :  { %1381 = shalt.err (!%p1378_p10)
}
  0x1b   :  { %s1382_s27 = scalar_lea.vmem %s32_s18, 256  ;;  %p1387_p12 = scmp.lt.s32.totalorder %s32_s18, %s32_s18 }
  0x1c   :  { %p1383_p11 = scmp.ne.s32.totalorder %s32_s18, %s1382_s27  ;;  %p1388_p13 = scmp.lt.s32.totalorder %s1382_s27, %s1382_s27 }
  0x1e   :  { %p1389_p0 = por %p1388_p13, %p1387_p12 }
  0x20   :  { %p1390_p1 = pnand %p1389_p0, %p1383_p11 }
  0x22   :  { %1393 = shalt.err (!%p1390_p1)
}
  0x23   :  { %s1472_s2 = smov 64   ;;  %s1473_s19 = smov 4  }
  0x24   :  { %37 = dma.hbm_to_vmem [thread:$0]  %s1825_s1, 256, %s32_s18, [#allocation3], %s1472_s2, %s1472_s2, %s1473_s19  }
  0x25   :  { %s1474_s30 = smov [#allocation7]   ;;  %s1475_s17 = smov [#allocation8]  }
  0x26   :  { %s66_s16 = sshll.u32 %s1474_s30, 4  ;;  %s79_s20 = sshll.u32 %s1475_s17, 4  ;;  %s67_s16 = int_to_ptr.vmem [resolvable:$true] %s66_s16  ;;  %s1591_s20 = int_to_ptr.vmem [resolvable:$true] %s79_s20 }
  0x27   :  { %s1394_s23 = scalar_lea.hbm %s1832_s8, 16 }
  0x28   :  { %p1395_p2 = scmp.ne.s32.totalorder %s1832_s8, %s1394_s23  ;;  %p1398_p3 = scmp.lt.u32.totalorder %s1394_s23, %s1832_s8 }
  0x2a   :  { %p1400_p4 = pnand %p1398_p3, %p1395_p2 }
  0x2c   :  { %1403 = shalt.err (!%p1400_p4)
}
  0x2d   :  { %s1404_s1 = scalar_lea.vmem %s67_s16, 16  ;;  %s1408_s18 = scalar_lea.vmem %s67_s16, 32 }
  0x2e   :  { %p1405_p5 = scmp.ne.s32.totalorder %s67_s16, %s1404_s1  ;;  %p1409_p6 = scmp.lt.s32.totalorder %s67_s16, %s67_s16 }
  0x2f   :  { %p1410_p7 = scmp.lt.s32.totalorder %s1408_s18, %s1404_s1 }
  0x31   :  { %p1411_p8 = por %p1410_p7, %p1409_p6 }
  0x33   :  { %p1412_p9 = pnand %p1411_p8, %p1405_p5 }
  0x35   :  { %1415 = shalt.err (!%p1412_p9)
}
  0x36   :  { %69 = dma.hbm_to_vmem [thread:$0]  %s1832_s8, 16, %s67_s16, [#allocation6]  }
  0x37   :  { %s1416_s21 = scalar_lea.hbm %s1835_s11, 128 }
  0x38   :  { %p1417_p10 = scmp.ne.s32.totalorder %s1835_s11, %s1416_s21  ;;  %p1420_p11 = scmp.lt.u32.totalorder %s1416_s21, %s1835_s11 }
  0x3a   :  { %p1422_p12 = pnand %p1420_p11, %p1417_p10 }
  0x3c   :  { %1425 = shalt.err (!%p1422_p12)
}
  0x3d   :  { %s1426_s26 = scalar_lea.vmem %s1591_s20, 128  ;;  %p1431_p0 = scmp.lt.s32.totalorder %s1591_s20, %s1591_s20 }
  0x3e   :  { %p1427_p13 = scmp.ne.s32.totalorder %s1591_s20, %s1426_s26  ;;  %p1432_p1 = scmp.lt.s32.totalorder %s1426_s26, %s1426_s26 }
  0x40   :  { %p1433_p2 = por %p1432_p1, %p1431_p0 }
  0x42   :  { %p1434_p3 = pnand %p1433_p2, %p1427_p13 }
  0x44   :  { %1437 = shalt.err (!%p1434_p3)
}
  0x45   :  { %85 = dma.hbm_to_vmem [thread:$0]  %s1835_s11, 128, %s1591_s20, [#allocation9], %s1472_s2, %s1472_s2, %s1473_s19  }
  0x46   :  { %1460 = dma.done.wait [#allocation3], 256  }
  0x47   :  { %1461 = vsyncadd [#allocation3], 4294967040 }
  0x48   :  { %1462 = dma.done.wait [#allocation6], 272  }
  0x49   :  { %1463 = vsyncadd [#allocation6], 4294967024 }
  0x4a   :  { %1464 = dma.done.wait [#allocation9], 128  }
  0x4b   :  { %1465 = vsyncadd [#allocation9], 4294967168  ;;  %v1310_v0 = vld [vmem:[%s1824_s0] sm:$0xff]   ;;  %v1311_v1 = vld [vmem:[%s1824_s0 + $0x8] sm:$0xff]   ;;  %vm165_vm0 = vcmask 523264   ;;  %s1476_s1 = smov 48  }
  0x4c   :  { %1210 = vmatprep.subr.bf16.mxu1 %v1310_v0  ;;  %1194 = vmatprep.subr.bf16.mxu0 %v1310_v0  ;;  %v1631_v2 = vld [vmem:[#allocation2] sm:$0xff]   ;;  %v1637_v4 = vld [vmem:[#allocation2 + $0x8] sm:$0xff]   ;;  %v1316_v8 = vld [vmem:[%s1830_s6 + $0x10] sm:$0xff]   ;;  %v1477_v13 = vmov 0   ;;  %s1478_s16 = smov 96   ;;  %vm376_vm1 = vcmask 392192  }
  0x4d   :  { %1211 = vmatpush3.bf16.msra.mxu1 %v1310_v0  ;;  %1195 = vmatpush3.bf16.msra.mxu0 %v1310_v0  ;;  %v1314_v3 = vld [vmem:[%s1830_s6] sm:$0xff]   ;;  %v1315_v6 = vld [vmem:[%s1830_s6 + $0x8] sm:$0xff]   ;;  %v1320_v9 = vld [vmem:[%s1829_s5 + $0x10] sm:$0xff]   ;;  %vm389_vm2 = vcmask 785408   ;;  %vm481_vm3 = vcmask 130048   ;;  %vm1480_vm4 = vmmov 0  }
  0x4e   :  { %1212 = vmatprep.subr.bf16.mxu1 %v1311_v1  ;;  %1196 = vmatprep.subr.bf16.mxu0 %v1311_v1  ;;  %v1318_v5 = vld [vmem:[%s1829_s5] sm:$0xff]   ;;  %v1319_v7 = vld [vmem:[%s1829_s5 + $0x8] sm:$0xff]   ;;  %v1317_v10 = vld [vmem:[%s1830_s6 + $0x18] sm:$0xff]   ;;  %vm760_vm5 = vcmask 261120  }
  0x4f   :  { %1218 = vmatprep.mubr.msk.bf16.mxu1 %vm165_vm0, %v1314_v3  ;;  %1202 = vmatprep.mubr.msk.bf16.mxu0 %vm165_vm0, %v1318_v5  ;;  %v1321_v11 = vld [vmem:[%s1829_s5 + $0x18] sm:$0xff]   ;;  %v1322_v12 = vld [vmem:[%s1831_s7] sm:$0xff]   ;;  %v1323_v14 = vld [vmem:[%s1831_s7 + $0x8] sm:$0xff]  }
  0x50   :  { %358 = vrot.lane.b32.xlu1 %v1311_v1, %s1476_s1  ;;  %356 = vrot.lane.b32.xlu0 %v1310_v0, %s1476_s1  ;;  %v1324_v15 = vld [vmem:[%s1831_s7 + $0x10] sm:$0xff]   ;;  %v1325_v16 = vld [vmem:[%s1831_s7 + $0x18] sm:$0xff]   ;;  %v1106_v63 = vld [vmem:[#allocation7] ss:$0 sm:$0xff] }
  0x51   :  { %1213 = vmatpush3.bf16.msra.mxu1 %v1311_v1  ;;  %1197 = vmatpush3.bf16.msra.mxu0 %v1311_v1  ;;  %v1326_v17 = vld [vmem:[%s1831_s7 + $0x20] sm:$0xff]   ;;  %v1327_v18 = vld [vmem:[%s1831_s7 + $0x28] sm:$0xff]   ;;  %v1328_v19 = vld [vmem:[%s1831_s7 + $0x30] sm:$0xff]  }
  0x52   :  { %1214 = vmatprep.subr.bf16.mxu1 %v1631_v2  ;;  %1198 = vmatprep.subr.bf16.mxu0 %v1631_v2  ;;  %v1329_v20 = vld [vmem:[%s1831_s7 + $0x38] sm:$0xff]   ;;  %v1330_v21 = vld [vmem:[%s1831_s7 + $0x40] sm:$0xff]  }
  0x53   :  { %1309 = vset.pattern.permute.xlu1 %v1477_v13  ;;  %1308 = vset.pattern.permute.xlu0 %v1477_v13  ;;  %v1331_v62 = vld [vmem:[%s1833_s9] sm:$0xff]  }
  0x55   :  { %1215 = vmatpush3.bf16.msra.mxu1 %v1631_v2  ;;  %1199 = vmatpush3.bf16.msra.mxu0 %v1631_v2 }
  0x56   :  { %1216 = vmatprep.subr.bf16.mxu1 %v1637_v4  ;;  %1200 = vmatprep.subr.bf16.mxu0 %v1637_v4 }
  0x59   :  { %1217 = vmatpush3.bf16.msra.mxu1 %v1637_v4  ;;  %1201 = vmatpush3.bf16.msra.mxu0 %v1637_v4 }
  0x5a   :  { %490 = vmatprep.subr.bf16.mxu0 %v1477_v13 }
  0x5c   :  { %1219 = vmatmul.mubr.msk.bf16.vlgmr.msra.gmra.mrb[0].mxu1 %vm165_vm0, %v1315_v6  ;;  %1203 = vmatmul.mubr.msk.bf16.vlgmr.msra.gmra.mrb[0].mxu0 %vm165_vm0, %v1319_v7 }
  0x5d   :  { %1222 = vmatprep.mubr.msk.bf16.mxu1 %vm165_vm0, %v1316_v8  ;;  %1206 = vmatprep.mubr.msk.bf16.mxu0 %vm165_vm0, %v1320_v9 }
  0x5e   :  { %491 = vmatpush1.bf16.msra.mxu0 %v1322_v12 }
  0x5f   :  { %492 = vmatprep.subr.bf16.mxu0 %v1477_v13 }
  0x62   :  { %493 = vmatpush1.bf16.msra.mxu0 %v1323_v14 }
  0x63   :  { %494 = vmatprep.subr.bf16.mxu0 %v1477_v13 }
  0x64   :  { %1223 = vmatmul.mubr.msk.bf16.gmra.mrb[4].mxu1 %vm165_vm0, %v1317_v10  ;;  %1207 = vmatmul.mubr.msk.bf16.gmra.mrb[4].mxu0 %vm165_vm0, %v1321_v11 }
  0x65   :  { %1234 = vmatprep.mubr.msk.bf16.mxu1 %vm165_vm0, %v1331_v62 }
  0x66   :  { %495 = vmatpush1.bf16.msra.mxu0 %v1324_v15 }
  0x67   :  { %496 = vmatprep.subr.bf16.mxu0 %v1477_v13 }
  0x6a   :  { %497 = vmatpush1.bf16.msra.mxu0 %v1325_v16 }
  0x6b   :  { %498 = vmatprep.subr.bf16.mxu0 %v1477_v13 }
  0x6e   :  { %499 = vmatpush1.bf16.msra.mxu0 %v1326_v17 }
  0x6f   :  { %500 = vmatprep.subr.bf16.mxu0 %v1477_v13 }
  0x72   :  { %501 = vmatpush1.bf16.msra.mxu0 %v1327_v18 }
  0x73   :  { %502 = vmatprep.subr.bf16.mxu0 %v1477_v13 }
  0x76   :  { %503 = vmatpush1.bf16.msra.mxu0 %v1328_v19 }
  0x77   :  { %504 = vmatprep.subr.bf16.mxu0 %v1477_v13 }
  0x7a   :  { %505 = vmatpush1.bf16.msra.mxu0 %v1329_v20 }
  0x7b   :  { %506 = vmatprep.subr.bf16.mxu0 %v1477_v13 }
  0x7e   :  { %507 = vmatpush1.bf16.msra.mxu0 %v1330_v21 }
  0xc2   :  { %v357_v46 = vpop.permute.xlu0 %356  ;;  %v359_v47 = vpop.permute.xlu1 %358 }
 0x12f   :  { %v1220_v22 = vpop.f32.mrb[0].mxu1  ;;  %v1204_v23 = vpop.f32.mrb[0].mxu0 }
 0x130   :  { %v321_v24 = vpop.f32.mrb[1].mxu1  ;;  %v212_v25 = vpop.f32.mrb[1].mxu0 }
 0x131   :  { %v1221_v26 = vpop.f32.mrb[2].mxu1  ;;  %v1205_v27 = vpop.f32.mrb[2].mxu0 }
 0x132   :  { %v353_v28 = vpack.c.bf16 %v1221_v26, %v1220_v22  ;;  %v324_v29 = vpop.f32.mrb[3].mxu1  ;;  %v244_v30 = vpack.c.bf16 %v1205_v27, %v1204_v23  ;;  %v215_v31 = vpop.f32.mrb[3].mxu0 }
 0x133   :  { %v352_v32 = vpack.c.bf16 %v324_v29, %v321_v24  ;;  %v243_v33 = vpack.c.bf16 %v215_v31, %v212_v25  ;;  %v1332_v29 = vld [vmem:[%s1833_s9 + $0x8] sm:$0xff]   ;;  %v1335_v31 = vld [vmem:[%s1834_s10 + $0x10] sm:$0xff]  }
 0x134   :  { %370 = vrot.lane.b32.xlu1 %v353_v28, %s1478_s16  ;;  %v382_v52 = vsel %vm376_vm1, %v244_v30, %v359_v47  ;;  %v1333_v28 = vld [vmem:[%s1834_s10] sm:$0xff]   ;;  %v1334_v30 = vld [vmem:[%s1834_s10 + $0x8] sm:$0xff]  }
 0x135   :  { %368 = vrot.lane.b32.xlu0 %v352_v32, %s1478_s16  ;;  %v379_v48 = vsel %vm376_vm1, %v243_v33, %v357_v46  ;;  %v1336_v32 = vld [vmem:[%s1834_s10 + $0x18] sm:$0xff]   ;;  %v1337_v33 = vld [vmem:[%s1834_s10 + $0x20] sm:$0xff]   ;;  %v1344_v46 = vld [vmem:[%s1836_s12 + $0x10] sm:$0xff]  }
 0x137   :  { %v1224_v34 = vpop.f32.mrb[4].mxu1  ;;  %v1208_v35 = vpop.f32.mrb[4].mxu0 }
 0x138   :  { %v337_v36 = vpop.f32.mrb[5].mxu1  ;;  %v228_v37 = vpop.f32.mrb[5].mxu0 }
 0x139   :  { %v1225_v38 = vpop.f32.mrb[6].mxu1  ;;  %360 = vrot.lane.b32.xlu0 %v1631_v2, %s1476_s1  ;;  %v1209_v39 = vpop.f32.mrb[6].mxu0 }
 0x13a   :  { %v355_v40 = vpack.c.bf16 %v1225_v38, %v1224_v34  ;;  %v340_v41 = vpop.f32.mrb[7].mxu1  ;;  %v246_v42 = vpack.c.bf16 %v1209_v39, %v1208_v35  ;;  %v231_v43 = vpop.f32.mrb[7].mxu0  ;;  %v1338_v34 = vld [vmem:[%s1834_s10 + $0x28] sm:$0xff]   ;;  %v1339_v35 = vld [vmem:[%s1834_s10 + $0x30] sm:$0xff]  }
 0x13b   :  { %v354_v44 = vpack.c.bf16 %v340_v41, %v337_v36  ;;  %v245_v45 = vpack.c.bf16 %v231_v43, %v228_v37  ;;  %v1340_v36 = vld [vmem:[%s1834_s10 + $0x38] sm:$0xff]   ;;  %v1479_v43 = vmov 0.0  }
 0x13c   :  { %1266 = vmatprep.subr.bf16.mxu0 %v1479_v43 }
 0x13d   :  { %372 = vrot.lane.b32.xlu1 %v354_v44, %s1478_s16  ;;  %362 = vrot.lane.b32.xlu0 %v1637_v4, %s1476_s1  ;;  %v1342_v44 = vld [vmem:[%s1836_s12] sm:$0xff]  }
 0x141   :  { %374 = vrot.lane.b32.xlu1 %v355_v40, %s1478_s16 }
 0x1a6   :  { %v371_v51 = vpop.permute.xlu1 %370 }
 0x1a7   :  { %v369_v49 = vpop.permute.xlu0 %368  ;;  %v394_v53 = vsel %vm389_vm2, %v382_v52, %v371_v51 }
 0x1a8   :  { %v391_v50 = vsel %vm389_vm2, %v379_v48, %v369_v49  ;;  %1116 = vmatprep.mubr.msk.bf16.mxu0 %vm481_vm3, %v369_v49 }
 0x1a9   :  { %523 = vmatmul.mubr.bf16.vlgmr.msra.gmra.mrb[8].mxu0 %v391_v50 }
 0x1aa   :  { %1117 = vmatprep.mubr.msk.bf16.mxu0 %vm481_vm3, %v371_v51  ;;  %1267 = vmatpush3.bf16.msra.mxu0 %v1342_v44 }
 0x1ab   :  { %v361_v55 = vpop.permute.xlu0 %360  ;;  %1268 = vmatprep.subr.bf16.mxu0 %v1479_v43 }
 0x1ac   :  { %v385_v56 = vsel %vm376_vm1, %v245_v45, %v361_v55  ;;  %v1343_v45 = vld [vmem:[%s1836_s12 + $0x8] sm:$0xff]  }
 0x1ae   :  { %1269 = vmatpush3.bf16.msra.mxu0 %v1343_v45 }
 0x1af   :  { %v373_v54 = vpop.permute.xlu1 %372  ;;  %v363_v59 = vpop.permute.xlu0 %362  ;;  %1270 = vmatprep.subr.bf16.mxu0 %v1479_v43 }
 0x1b0   :  { %v397_v57 = vsel %vm389_vm2, %v385_v56, %v373_v54  ;;  %v388_v60 = vsel %vm376_vm1, %v246_v42, %v363_v59 }
 0x1b1   :  { %531 = vmatmul.mubr.bf16.gmra.mrb[12].mxu0 %v394_v53  ;;  %v1341_v53 = vld [vmem:[#allocation8] sm:$0xff]  }
 0x1b2   :  { %1118 = vmatprep.mubr.msk.bf16.mxu0 %vm481_vm3, %v373_v54  ;;  %1271 = vmatpush3.bf16.msra.mxu0 %v1344_v46  ;;  %v1345_v54 = vld [vmem:[%s1836_s12 + $0x18] sm:$0xff]  }
 0x1b3   :  { %v375_v58 = vpop.permute.xlu1 %374  ;;  %1272 = vmatprep.subr.bf16.mxu0 %v1479_v43 }
 0x1b4   :  { %v400_v61 = vsel %vm389_vm2, %v388_v60, %v375_v58  ;;  %v1346_v60 = vld [vmem:[%s1837_s13] sm:$0xff]  }
 0x1b6   :  { %1273 = vmatpush3.bf16.msra.mxu0 %v1345_v54 }
 0x1b9   :  { %539 = vmatmul.mubr.bf16.gmra.mrb[16].mxu0 %v397_v57 }
 0x1ba   :  { %1119 = vmatprep.mubr.msk.bf16.mxu0 %vm481_vm3, %v375_v58 }
 0x1c1   :  { %547 = vmatmul.mubr.bf16.gmra.mrb[20].mxu0 %v400_v61 }
 0x1c2   :  { %1274 = vmatprep.mubr.msk.bf16.mxu0 %vm1480_vm4, %v1479_v43 }
 0x27c   :  { %v524_v0 = vpop.f32.mrb[8].mxu0 }
 0x27d   :  { %v526_v1 = vpop.f32.mrb[9].mxu0  ;;  %v525_v3 = vadd.f32 %v1106_v63, %v524_v0 }
 0x27e   :  { %v527_v2 = vpop.f32.mrb[10].mxu0 }
 0x27f   :  { %v528_v4 = vadd.f32 %v1106_v63, %v527_v2  ;;  %v529_v5 = vpop.f32.mrb[11].mxu0  ;;  %v1348_v2 = vld [vmem:[%s1838_s14] sm:$0xff]  }
 0x280   :  { %v1022_v5 = vld [vmem:[%s1827_s3 + $0x8] sm:$0xff] }
 0x281   :  { %v575_v6 = vpack.c.bf16 %v528_v4, %v525_v3  ;;  %v1347_v3 = vld [vmem:[%s1837_s13 + $0x8] sm:$0xff]   ;;  %1030 = vperm.xlu1 %1309, %v1022_v5  }
 0x282   :  { %v1349_v4 = vld [vmem:[%s1838_s14 + $0x8] sm:$0xff]  }
 0x283   :  { %1226 = vmatprep.subr.bf16.mxu1 %v575_v6 }
 0x284   :  { %v532_v7 = vpop.f32.mrb[12].mxu0  ;;  %1227 = vmatpush3.bf16.msra.mxu1 %v575_v6  ;;  %v1021_v6 = vld [vmem:[%s1827_s3] sm:$0xff]  ;;  %s1481_s3 = smov [#allocation10]  }
 0x285   :  { %v534_v8 = vpop.f32.mrb[13].mxu0  ;;  %v533_v10 = vadd.f32 %v1106_v63, %v532_v7  ;;  %1025 = vperm.xlu0 %1308, %v1021_v6   ;;  %v1037_v7 = vld [vmem:[%s1828_s4] sm:$0xff] }
 0x286   :  { %v535_v9 = vpop.f32.mrb[14].mxu0  ;;  %v1038_v8 = vld [vmem:[%s1828_s4 + $0x8] sm:$0xff]  ;;  %1041 = vperm.xlu1 %1309, %v1037_v7   ;;  %s1072_s4 = sshll.u32 %s1481_s3, 4  ;;  %s1073_s4 = int_to_ptr.vmem [resolvable:$true] %s1072_s4 }
 0x287   :  { %v536_v11 = vadd.f32 %v1106_v63, %v535_v9  ;;  %v537_v12 = vpop.f32.mrb[15].mxu0  ;;  %s1438_s14 = scalar_lea.vmem %s1073_s4, 512  ;;  %p1443_p5 = scmp.lt.s32.totalorder %s1073_s4, %s1073_s4 }
 0x288   :  { %p1439_p4 = scmp.ne.s32.totalorder %s1073_s4, %s1438_s14  ;;  %p1444_p6 = scmp.lt.s32.totalorder %s1438_s14, %s1438_s14 }
 0x289   :  { %v576_v13 = vpack.c.bf16 %v536_v11, %v533_v10  ;;  %1046 = vperm.xlu0 %1308, %v1038_v8  }
 0x28a   :  { %p1445_p7 = por %p1444_p6, %p1443_p5 }
 0x28b   :  { %1228 = vmatprep.subr.bf16.mxu1 %v576_v13 }
 0x28c   :  { %v540_v14 = vpop.f32.mrb[16].mxu0  ;;  %1229 = vmatpush3.bf16.msra.mxu1 %v576_v13  ;;  %p1446_p8 = pnand %p1445_p7, %p1439_p4 }
 0x28d   :  { %v542_v15 = vpop.f32.mrb[17].mxu0  ;;  %v541_v17 = vadd.f32 %v1106_v63, %v540_v14 }
 0x28e   :  { %v543_v16 = vpop.f32.mrb[18].mxu0 }
 0x28f   :  { %v544_v18 = vadd.f32 %v1106_v63, %v543_v16  ;;  %v545_v19 = vpop.f32.mrb[19].mxu0 }
 0x291   :  { %v577_v20 = vpack.c.bf16 %v544_v18, %v541_v17  ;;  %v1035_v17 = vld [vmem:[#allocation5] sm:$0xff] }
 0x293   :  { %1230 = vmatprep.subr.bf16.mxu1 %v577_v20 }
 0x294   :  { %v548_v21 = vpop.f32.mrb[20].mxu0  ;;  %1231 = vmatpush3.bf16.msra.mxu1 %v577_v20  ;;  %v1036_v20 = vld [vmem:[#allocation5 + $0x8] sm:$0xff] }
 0x295   :  { %v550_v22 = vpop.f32.mrb[21].mxu0  ;;  %v549_v24 = vadd.f32 %v1106_v63, %v548_v21 }
 0x296   :  { %v551_v23 = vpop.f32.mrb[22].mxu0 }
 0x297   :  { %v552_v25 = vadd.f32 %v1106_v63, %v551_v23  ;;  %v553_v26 = vpop.f32.mrb[23].mxu0 }
 0x299   :  { %v578_v27 = vpack.c.bf16 %v552_v25, %v549_v24 }
 0x29b   :  { %1232 = vmatprep.subr.bf16.mxu1 %v578_v27 }
 0x29c   :  { %1233 = vmatpush3.bf16.msra.mxu1 %v578_v27 }
 0x29d   :  { %1238 = vmatprep.subr.bf16.mxu1 %v1333_v28 }
 0x29f   :  { %1235 = vmatmul.mubr.msk.bf16.vlgmr.msra.gmra.mrb[8].mxu1 %vm165_vm0, %v1332_v29 }
 0x2a0   :  { %1239 = vmatpush3.bf16.msra.mxu1 %v1333_v28 }
 0x2a1   :  { %1240 = vmatprep.subr.bf16.mxu1 %v1334_v30 }
 0x2a4   :  { %1241 = vmatpush3.bf16.msra.mxu1 %v1334_v30 }
 0x2a5   :  { %1242 = vmatprep.subr.bf16.mxu1 %v1335_v31 }
 0x2a8   :  { %1243 = vmatpush3.bf16.msra.mxu1 %v1335_v31 }
 0x2a9   :  { %1244 = vmatprep.subr.bf16.mxu1 %v1336_v32 }
 0x2ac   :  { %1245 = vmatpush3.bf16.msra.mxu1 %v1336_v32 }
 0x2ad   :  { %1246 = vmatprep.subr.bf16.mxu1 %v1337_v33 }
 0x2b0   :  { %1247 = vmatpush3.bf16.msra.mxu1 %v1337_v33 }
 0x2b1   :  { %1248 = vmatprep.subr.bf16.mxu1 %v1338_v34 }
 0x2b4   :  { %1249 = vmatpush3.bf16.msra.mxu1 %v1338_v34 }
 0x2b5   :  { %1250 = vmatprep.subr.bf16.mxu1 %v1339_v35 }
 0x2b8   :  { %1251 = vmatpush3.bf16.msra.mxu1 %v1339_v35 }
 0x2b9   :  { %1252 = vmatprep.subr.bf16.mxu1 %v1340_v36 }
 0x2bc   :  { %1253 = vmatpush3.bf16.msra.mxu1 %v1340_v36 }
 0x2bd   :  { %1258 = vmatprep.subr.bf16.mxu1 %v1479_v43 }
 0x300   :  { %v1031_v15 = vpop.permute.xlu1 %1030 }
 0x304   :  { %v1026_v16 = vpop.permute.xlu0 %1025 }
 0x305   :  { %v1042_v18 = vpop.permute.xlu1 %1041 }
 0x306   :  { %v1049_v24 = vmul.f32 %v1042_v18, %v1035_v17 }
 0x308   :  { %v1047_v21 = vpop.permute.xlu0 %1046 }
 0x309   :  { %v1050_v30 = vmul.f32 %v1047_v21, %v1036_v20 }
 0x372   :  { %v1236_v37 = vpop.f32.mrb[8].mxu1 }
 0x373   :  { %v629_v38 = vpop.f32.mrb[9].mxu1 }
 0x374   :  { %v1237_v39 = vpop.f32.mrb[10].mxu1 }
 0x375   :  { %v645_v40 = vpack.c.bf16 %v1237_v39, %v1236_v37  ;;  %v632_v41 = vpop.f32.mrb[11].mxu1 }
 0x376   :  { %v644_v42 = vpack.c.bf16 %v632_v41, %v629_v38 }
 0x378   :  { %1254 = vmatprep.mubr.bf16.mxu1 %v644_v42 }
 0x379   :  { %1255 = vmatmul.mubr.bf16.vlgmr.msra.gmra.mrb[12].mxu1 %v645_v40 }
 0x37a   :  { %1262 = vmatprep.mubr.msk.bf16.mxu1 %vm1480_vm4, %v1479_v43 }
 0x44c   :  { %v1256_v47 = vpop.f32.mrb[12].mxu1 }
 0x44d   :  { %v1761_v48 = vpop.f32.mrb[13].mxu1 }
 0x44e   :  { %v1763_v49 = vpop.f32.mrb[14].mxu1 }
 0x44f   :  { %v754_v50 = vpack.c.bf16 %v1763_v49, %v1256_v47  ;;  %v1766_v51 = vpop.f32.mrb[15].mxu1 }
 0x450   :  { %v753_v52 = vpack.c.bf16 %v1766_v51, %v1761_v48 }
 0x452   :  { %1259 = vmatpush3.bf16.msra.mxu1 %v753_v52 }
 0x453   :  { %1260 = vmatprep.subr.bf16.mxu1 %v1479_v43 }
 0x456   :  { %1261 = vmatpush3.bf16.msra.mxu1 %v754_v50 }
 0x459   :  { %1263 = vmatmul.mubr.msk.bf16.vlgmr.msra.gmra.mrb[16].mxu1 %vm760_vm5, %v1341_v53 }
 0x45a   :  { %1280 = vmatprep.mubr.msk.bf16.mxu1 %vm481_vm3, %v1346_v60 }
 0x52c   :  { %v798_v55 = vpop.f32.mrb[16].mxu1 }
 0x52d   :  { %v1264_v56 = vpop.f32.mrb[17].mxu1 }
 0x52e   :  { %v801_v57 = vpop.f32.mrb[18].mxu1 }
 0x52f   :  { %v805_v58 = vpack.c.bf16 %v801_v57, %v798_v55  ;;  %v1265_v59 = vpop.f32.mrb[19].mxu1 }
 0x531   :  { %1275 = vmatmul.mubr.msk.bf16.vlgmr.msra.gmra.mrb[24].mxu0 %vm165_vm0, %v805_v58 }
 0x604   :  { %v867_v61 = vpop.f32.mrb[24].mxu0 }
 0x605   :  { %v1276_v62 = vpop.f32.mrb[25].mxu0 }
 0x606   :  { %v870_v63 = vpop.f32.mrb[26].mxu0 }
 0x607   :  { %v878_v0 = vpack.c.bf16 %v870_v63, %v867_v61  ;;  %v1277_v1 = vpop.f32.mrb[27].mxu0 }
 0x609   :  { %1278 = vmatprep.subr.bf16.mxu1 %v878_v0 }
 0x60a   :  { %1279 = vmatpush3.bf16.msra.mxu1 %v878_v0 }
 0x60b   :  { %1284 = vmatprep.subr.bf16.mxu1 %v1348_v2 }
 0x60d   :  { %1281 = vmatmul.mubr.msk.bf16.vlgmr.msra.gmra.mrb[20].mxu1 %vm481_vm3, %v1347_v3 }
 0x60e   :  { %1285 = vmatpush3.bf16.msra.mxu1 %v1348_v2 }
 0x60f   :  { %1286 = vmatprep.subr.bf16.mxu1 %v1349_v4 }
 0x612   :  { %1287 = vmatpush3.bf16.msra.mxu1 %v1349_v4 }
 0x6e0   :  { %v1282_v9 = vpop.f32.mrb[20].mxu1 }
 0x6e1   :  { %v929_v10 = vpop.f32.mrb[21].mxu1 }
 0x6e2   :  { %v1283_v11 = vpop.f32.mrb[22].mxu1 }
 0x6e3   :  { %v945_v12 = vpack.c.bf16 %v1283_v11, %v1282_v9  ;;  %v932_v13 = vpop.f32.mrb[23].mxu1 }
 0x6e4   :  { %v944_v14 = vpack.c.bf16 %v932_v13, %v929_v10 }
 0x6e6   :  { %1288 = vmatprep.mubr.msk.bf16.mxu1 %vm760_vm5, %v944_v14 }
 0x6e7   :  { %1289 = vmatmul.mubr.msk.bf16.vlgmr.msra.gmra.mrb[24].mxu1 %vm760_vm5, %v945_v12 }
 0x7ba   :  { %v1290_v19 = vpop.f32.mrb[24].mxu1 }
 0x7bb   :  { %v1019_v22 = vsub.f32 %v1256_v47, %v1290_v19  ;;  %v1002_v23 = vpop.f32.mrb[25].mxu1 }
 0x7bc   :  { %v1017_v25 = vsub.f32 %v1761_v48, %v1002_v23  ;;  %v1291_v26 = vpop.f32.mrb[26].mxu1 }
 0x7bd   :  { %v1033_v27 = vmul.f32 %v1026_v16, %v1019_v22  ;;  %v1020_v28 = vsub.f32 %v1763_v49, %v1291_v26  ;;  %1055 = vrot.lane.b32.xlu1 %v1019_v22, %s1472_s2  ;;  %v1005_v29 = vpop.f32.mrb[27].mxu1 }
 0x7be   :  { %v1018_v31 = vsub.f32 %v1766_v51, %v1005_v29 }
 0x7bf   :  { %v1051_v32 = vadd.f32 %v1049_v24, %v1033_v27  ;;  %v1034_v33 = vmul.f32 %v1031_v15, %v1020_v28  ;;  %1057 = vrot.lane.b32.xlu0 %v1020_v28, %s1472_s2 }
 0x7c1   :  { %1064 = vst.msk [vmem:[#allocation10 + $0x8] sm:$0xff] %vm165_vm0, %v1051_v32  ;;  %v1052_v34 = vadd.f32 %v1050_v30, %v1034_v33 }
 0x7c3   :  { %1066 = vst.msk [vmem:[#allocation10 + $0x18] sm:$0xff] %vm165_vm0, %v1052_v34 }
 0x82f   :  { %v1056_v35 = vpop.permute.xlu1 %1055 }
 0x830   :  { %v1061_v36 = vsel %vm165_vm0, %v1017_v25, %v1056_v35 }
 0x831   :  { %1063 = vst [vmem:[#allocation10] sm:$0xff] %v1061_v36  ;;  %v1058_v37 = vpop.permute.xlu0 %1057 }
 0x832   :  { %v1062_v38 = vsel %vm165_vm0, %v1018_v31, %v1058_v37 }
 0x833   :  { %1065 = vst [vmem:[#allocation10 + $0x10] sm:$0xff] %v1062_v38 }
 0x834   :  { %1449 = shalt.err (!%p1446_p8)
}
 0x835   :  { %s1450_s25 = scalar_lea.hbm %s1839_s15, 512 }
 0x836   :  { %p1451_p9 = scmp.ne.s32.totalorder %s1839_s15, %s1450_s25  ;;  %p1454_p10 = scmp.lt.u32.totalorder %s1450_s25, %s1839_s15 }
 0x838   :  { %p1456_p11 = pnand %p1454_p10, %p1451_p9 }
 0x83a   :  { %1459 = shalt.err (!%p1456_p11)
}
 0x83b   :  { %s1482_s7 = smov 256   ;;  %s1483_s27 = smov 16  }
 0x83c   :  { %1078 = dma.vmem_to_hbm [thread:$0]  %s1073_s4, 512, %s1839_s15, [#allocation4], %s1482_s7, %s1482_s7, %s1483_s27  }
 0x83d   :  { %1466 = dma.done.wait [#allocation4], 512  }
 0x83e   :  { %1467 = vsyncadd [#allocation4], 4294966784 }
 0x83f   :  { %1082 = vsyncpa [#allocation3], 1 }
 0x840   :  { %1083 = vsyncpa [#allocation6], 1 }
 0x841   :  { %1084 = vsyncpa [#allocation9], 1 }
 0x842   :  { %1085 = vsyncpa [#allocation4], 1 }

</bundles_post_ra>
